<compile_context>
chip_gen: v7x
topology: tpu7x:2x2x1
jax: 0.10.0
libtpu: 0.0.40
codegen_flags: <defaults>
</compile_context>

<pallas_src>
import jax
import jax.numpy as jnp
from jax.experimental import pallas as pl
from jax.experimental.pallas import tpu as pltpu


def _subpixel_prelu_kernel(x_ref, p_ref, alpha_ref, o_ref):
    # x_ref    : (1, Cb*r*r, H, W)   input sub-channels for this (n, c-group)
    # p_ref    : (r*r*W, r*r*W)      0/1 column-permutation matrix (f32, exact)
    # alpha_ref: (1,) in SMEM        PReLU slope
    # o_ref    : (1, Cb, H, r*r*W)   output, flat (i, w, j) packed into lanes
    cb = o_ref.shape[1]
    H = x_ref.shape[2]
    W = x_ref.shape[3]
    rr = x_ref.shape[1] // cb  # r*r

    # (1, Cb*rr, H, W) -> (Cb, rr, H, W): leading-dims-only reshape (free).
    x = x_ref[...].reshape(cb, rr, H, W)

    # LHS[c*H + h, k*W + w] = x[c, k, h, w]   (k = i*r + j)
    lhs = jnp.concatenate(
        [x[:, k, :, :].reshape(cb * H, W) for k in range(rr)], axis=-1
    )  # (Cb*H, rr*W)

    # One MXU matmul does the whole pixel-shuffle lane permutation:
    # out[c*H + h, i*W*r + w*r + j] = x[c, i*r + j, h, w]
    out = jnp.dot(lhs, p_ref[...], preferred_element_type=jnp.float32)

    # PReLU (single shared slope, nn.PReLU() default).
    alpha = alpha_ref[0]
    out = jnp.where(out > 0, out, alpha * out)

    # (Cb*H, rr*W) -> (1, Cb, H, rr*W): leading-dims split only (free).
    o_ref[...] = out.reshape(1, cb, H, rr * W).astype(o_ref.dtype)


def subpixel_convolutional_block(x, alpha, scaling_factor=2):
    """x: (N, C*r*r, H, W) -> (N, C, H*r, W*r).  PixelShuffle(r) + PReLU."""
    N, Crr, H, W = x.shape
    r = scaling_factor
    rr = r * r
    assert Crr % rr == 0, "channels must be divisible by scaling_factor**2"
    C = Crr // rr

    # --- coarsen the grid: pick a channel-group block size ------------------
    itemsize = jnp.dtype(x.dtype).itemsize
    bytes_per_group = rr * H * W * itemsize          # one output channel's input
    target_block_bytes = 1 << 20                     # ~1 MiB input per grid step
    cb = max(1, min(C, target_block_bytes // max(bytes_per_group, 1)))
    while C % cb:                                    # keep the grid exact
        cb -= 1

    # --- 0/1 permutation matrix (built once, f32 => exact) ------------------
    # row index  k*W + w   with k = i*r + j
    # col index  i*(W*r) + w*r + j
    kw = jnp.arange(rr * W)
    k = kw // W
    w = kw % W
    i = k // r
    j = k % r
    dest = i * (W * r) + w * r + j
    P = (dest[:, None] == jnp.arange(rr * W)[None, :]).astype(jnp.float32)

    # --- VMEM budget (explicit, safe on v7x's smaller VMEM) ------------------
    in_block_bytes = cb * rr * H * W * itemsize
    out_block_bytes = in_block_bytes
    p_bytes = (rr * W) * (rr * W) * 4
    est = 3 * (in_block_bytes + out_block_bytes) + p_bytes + (2 << 20)
    vmem_limit = int(min(32 << 20, max(8 << 20, est)))

    grid_spec = pltpu.PrefetchScalarGridSpec(
        num_scalar_prefetch=0,
        grid=(N, C // cb),
        in_specs=[
            pl.BlockSpec((1, cb * rr, H, W), lambda n, c: (n, c, 0, 0)),
            pl.BlockSpec((rr * W, rr * W), lambda n, c: (0, 0)),
            pl.BlockSpec(memory_space=pltpu.MemorySpace.SMEM),
        ],
        out_specs=pl.BlockSpec((1, cb, H, rr * W), lambda n, c: (n, c, 0, 0)),
    )

    out_flat = pl.pallas_call(
        _subpixel_prelu_kernel,
        out_shape=jax.ShapeDtypeStruct((N, C, H, rr * W), x.dtype),
        grid_spec=grid_spec,
        compiler_params=pltpu.CompilerParams(
            dimension_semantics=("parallel", "parallel"),
            vmem_limit_bytes=vmem_limit,
        ),
    )(x, P, alpha)

    # Contiguous (free) reshape: (N, C, H, r*r*W) -> (N, C, H*r, W*r).
    return out_flat.reshape(N, C, H * r, W * r)


def _reference(x, alpha, r=2):
    # Pure-JAX reference: torch.nn.PixelShuffle + PReLU(num_parameters=1).
    N, Crr, H, W = x.shape
    C = Crr // (r * r)
    y = x.reshape(N, C, r, r, H, W)
    y = jnp.transpose(y, (0, 1, 4, 2, 5, 3)).reshape(N, C, H * r, W * r)
    return jnp.where(y > 0, y, alpha[0] * y)


if __name__ == "__main__":
    key = jax.random.PRNGKey(0)
    N, n_channels, H, W = 2, 4, 16, 16
    scaling_factor = 2

    x = jax.random.normal(key, (N, n_channels, H, W), dtype=jnp.float32)
    # nn.PReLU() default: single parameter initialized to 0.25.
    alpha = jnp.array([0.25], dtype=jnp.float32)

    out = subpixel_convolutional_block(x, alpha, scaling_factor=scaling_factor)
    out = jax.block_until_ready(out)

    ref = _reference(x, alpha, r=scaling_factor)
    assert out.shape == (N, n_channels // scaling_factor ** 2,
                         H * scaling_factor, W * scaling_factor)
    assert jnp.allclose(out, ref, atol=1e-5, rtol=1e-5)

    print("KERNEL_OK")
</pallas_src>

<mosaic_0001>
module attributes {stable_mosaic.version = 11 : i64} {
  func.func @_subpixel_prelu_kernel(%arg0: i32, %arg1: i32, %arg2: memref<1x4x16x16xf32, #tpu.memory_space<vmem>>, %arg3: memref<64x64xf32, #tpu.memory_space<vmem>>, %arg4: memref<1xf32, #tpu.memory_space<smem>>, %arg5: memref<1x1x16x64xf32, #tpu.memory_space<vmem>>) attributes {dimension_semantics = [#tpu.dimension_semantics<parallel>, #tpu.dimension_semantics<parallel>], iteration_bounds = array<i64: 2, 1>, scalar_prefetch = 0 : i64, scratch_operands = 0 : i64, tpu.core_type = #tpu.core_type<tc>, window_params = [{transform_indices = @transform_0, window_bounds = array<i64: 1, 4, 16, 16>}, {pipeline_mode = #tpu.pipeline_mode<synchronous>, transform_indices = @transform_1, window_bounds = array<i64: 64, 64>}, {transform_indices = @transform_2, window_bounds = array<i64: 1>}, {transform_indices = @transform_3, window_bounds = array<i64: 1, 1, 16, 64>}]} {
    %c0 = arith.constant 0 : index
    %c0_0 = arith.constant 0 : index
    %c0_1 = arith.constant 0 : index
    %c0_2 = arith.constant 0 : index
    %0 = vector.load %arg2[%c0, %c0_0, %c0_1, %c0_2] : memref<1x4x16x16xf32, #tpu.memory_space<vmem>>, vector<1x4x16x16xf32>
    %1 = vector.extract_strided_slice %0 {offsets = [0, 0, 0, 0], sizes = [1, 1, 16, 16], strides = [1, 1, 1, 1]} : vector<1x4x16x16xf32> to vector<1x1x16x16xf32>
    %2 = vector.shape_cast %1 : vector<1x1x16x16xf32> to vector<1x16x16xf32>
    %3 = vector.shape_cast %2 : vector<1x16x16xf32> to vector<16x16xf32>
    %4 = vector.extract_strided_slice %0 {offsets = [0, 1, 0, 0], sizes = [1, 1, 16, 16], strides = [1, 1, 1, 1]} : vector<1x4x16x16xf32> to vector<1x1x16x16xf32>
    %5 = vector.shape_cast %4 : vector<1x1x16x16xf32> to vector<1x16x16xf32>
    %6 = vector.shape_cast %5 : vector<1x16x16xf32> to vector<16x16xf32>
    %7 = vector.extract_strided_slice %0 {offsets = [0, 2, 0, 0], sizes = [1, 1, 16, 16], strides = [1, 1, 1, 1]} : vector<1x4x16x16xf32> to vector<1x1x16x16xf32>
    %8 = vector.shape_cast %7 : vector<1x1x16x16xf32> to vector<1x16x16xf32>
    %9 = vector.shape_cast %8 : vector<1x16x16xf32> to vector<16x16xf32>
    %10 = vector.extract_strided_slice %0 {offsets = [0, 3, 0, 0], sizes = [1, 1, 16, 16], strides = [1, 1, 1, 1]} : vector<1x4x16x16xf32> to vector<1x1x16x16xf32>
    %11 = vector.shape_cast %10 : vector<1x1x16x16xf32> to vector<1x16x16xf32>
    %12 = vector.shape_cast %11 : vector<1x16x16xf32> to vector<16x16xf32>
    %13 = tpu.concatenate %3, %6, %9, %12 in 1 : vector<16x16xf32>, vector<16x16xf32>, vector<16x16xf32>, vector<16x16xf32> -> vector<16x64xf32>
    %c0_3 = arith.constant 0 : index
    %c0_4 = arith.constant 0 : index
    %14 = vector.load %arg3[%c0_3, %c0_4] : memref<64x64xf32, #tpu.memory_space<vmem>>, vector<64x64xf32>
    %cst = arith.constant dense<0.000000e+00> : vector<16x64xf32>
    %15 = tpu.matmul %13, %14, %cst {dimension_numbers = #tpu.dot_dimension_numbers<[1], [0], [0], [1], [0, 0, 1, 1], [], []>} : vector<16x64xf32>, vector<64x64xf32>, vector<16x64xf32> -> vector<16x64xf32>
    %c0_5 = arith.constant 0 : index
    %16 = memref.load %arg4[%c0_5] : memref<1xf32, #tpu.memory_space<smem>>
    %cst_6 = arith.constant 0.000000e+00 : f32
    %17 = vector.broadcast %cst_6 : f32 to vector<16x64xf32>
    %18 = arith.cmpf ogt, %15, %17 : vector<16x64xf32>
    %19 = vector.broadcast %16 : f32 to vector<16x64xf32>
    %20 = arith.mulf %19, %15 : vector<16x64xf32>
    %21 = arith.select %18, %15, %20 : vector<16x64xi1>, vector<16x64xf32>
    %22 = vector.shape_cast %21 : vector<16x64xf32> to vector<1x1x16x64xf32>
    %c0_7 = arith.constant 0 : index
    %c0_8 = arith.constant 0 : index
    %c0_9 = arith.constant 0 : index
    %c0_10 = arith.constant 0 : index
    %23 = vector.load %arg5[%c0_7, %c0_8, %c0_9, %c0_10] : memref<1x1x16x64xf32, #tpu.memory_space<vmem>>, vector<1x1x16x64xf32>
    tpu.vector_store %arg5[%c0_7, %c0_8, %c0_9, %c0_10], %22 {strides = array<i32>} : memref<1x1x16x64xf32, #tpu.memory_space<vmem>>, vector<1x1x16x64xf32>,
    return
  }
  func.func @transform_0(%arg0: i32, %arg1: i32) -> (i32, i32, i32, i32) {
    %c0_i32 = arith.constant 0 : i32
    %c0_i32_0 = arith.constant 0 : i32
    %c0_i32_1 = arith.constant 0 : i32
    return %arg0, %arg1, %c0_i32, %c0_i32_0 : i32, i32, i32, i32
  }
  func.func @transform_1(%arg0: i32, %arg1: i32) -> (i32, i32) {
    %c0_i32 = arith.constant 0 : i32
    %c0_i32_0 = arith.constant 0 : i32
    %c0_i32_1 = arith.constant 0 : i32
    return %c0_i32, %c0_i32_0 : i32, i32
  }
  func.func @transform_2(%arg0: i32, %arg1: i32) -> i32 {
    %c0_i32 = arith.constant 0 : i32
    %c0_i32_0 = arith.constant 0 : i32
    return %c0_i32 : i32
  }
  func.func @transform_3(%arg0: i32, %arg1: i32) -> (i32, i32, i32, i32) {
    %c0_i32 = arith.constant 0 : i32
    %c0_i32_0 = arith.constant 0 : i32
    %c0_i32_1 = arith.constant 0 : i32
    return %arg0, %arg1, %c0_i32, %c0_i32_0 : i32, i32, i32, i32
  }
}

</mosaic_0001>

<bundles_post_ra>
// kernel: tpu_custom_call.1
= control target key start
LH: loop header
LB: loop body
LE: loop exit
PB: predicated region body
PF: predicated region fallthrough
CT: control target
= control target key end

     0   :  { %s1044_s0 = inlined_call_operand.hbm [shape: f32[2,4,16,16], index: 0, kind: input, shape index: {}]   ;;  %s1045_s1 = inlined_call_operand.hbm [shape: f32[64,64], index: 1, kind: input, shape index: {}]   ;;  %s1046_s2 = inlined_call_operand.<no memory space> [shape: f32[1], index: 2, kind: input, shape index: {}]   ;;  %s1047_s3 = inlined_call_operand.hbm [shape: f32[2,1,16,64], index: 3, kind: output, shape index: {}]  }
   0x1   :  { %8 = sst [smem:[#allocation2]] %s1046_s2 }
   0x2   :  { %9 = vsyncpa [#allocation4], 0 }
   0x3   :  { %11 = vsyncpa [#allocation4 + $0x1], 0 }
   0x4   :  { %12 = vsyncpa [#allocation7], 0 }
   0x5   :  { %13 = vsyncpa [#allocation5], 0 }
   0x6   :  { %15 = vsyncpa [#allocation5 + $0x1], 0  ;;  %s804_s14 = smov 0   ;;  %s806_s15 = smov 0  }
   0x7   :  { %s808_s16 = smov 0   ;;  %s810_s17 = smov 0  }
   0x8   :  { %s812_s18 = smov 0   ;;  %s814_s19 = smov 0  }
   0x9 LB: > { %s479_s2 = sadd.s32 4294967295, %s769_s19   ;;  %s480_s20 = sadd.s32 4294967294, %s769_s19   ;;  %s769_s19 = sphi %s814_s19, %s21_s19   ;;  %s765_s18 = sphi %s812_s18, %s1071_s18   ;;  %s761_s17 = sphi %s810_s17, %s1070_s17   ;;  %s757_s16 = sphi %s808_s16, %s1069_s16   ;;  %s753_s15 = sphi %s806_s15, %s1068_s15   ;;  %s749_s14 = sphi %s804_s14, %s1067_s14  }
   0xa   : > { %p55_p0 = scmp.ne.s32.totalorder %s753_s15, %s749_s14  ;;  %p838_p1 = scmp.eq.s32.totalorder %s479_s2, 0 }
   0xb   : > { %p842_p2 = scmp.eq.s32.totalorder %s479_s2, 1  ;;  %p129_p3 = scmp.eq.s32.totalorder %s480_s20, 1 }
   0xc   : > { %s1052_s21 = scalar_select %p838_p1, 1, 0 }
   0xd   : > { %s1053_s22 = scalar_select %p842_p2, 1, 0 }
   0xe   : > { %p848_p4 = por %p838_p1, %p55_p0  ;;  %p481_p5 = scmp.ge.s32.totalorder %s769_s19, 1 }
   0xf   : > { %p853_p6 = por %p129_p3, %p55_p0  ;;  %p136_p7 = scmp.lt.s32.totalorder %s769_s19, 3 }
  0x10   : > { %s1054_s23 = scalar_select %p848_p4, 1, 0 }
  0x11   : > { %s1055_s24 = scalar_select %p853_p6, 1, 0 }
  0x12   : > { %p858_p8 = pnand %p481_p5, %p136_p7  ;;  %s771_s26 = smov [#allocation6]  }
  0x13   : > { %s148_s27 = sshll.u32 %s771_s26, 4  ;;  %s33_s29 = sadd.s32 1, %s765_s18  ;;  %s149_s27 = int_to_ptr.vmem [resolvable:$true] %s148_s27 }
  0x14   : > { %s1056_s25 = scalar_select %p858_p8, 1, 0 }
  0x15   : > { %p553_p9 = pneg %p858_p8  ;;  %s625_s5 = scalar_lea.hbm %s1045_s1, 1024 }
  0x16   : > { %p626_p12 = scmp.ne.s32.totalorder %s1045_s1, %s625_s5  ;;  %p632_p5 = scmp.lt.u32.totalorder %s625_s5, %s1045_s1 }
  0x17   : > { %p867_p11 = pnand %p553_p9, %p838_p1 }
  0x19   : > { %p627_p13 = pneg %p867_p11 }
  0x1b   : > { %p628_p0 = pnand %p627_p13, %p626_p12 }
  0x1d   : > { %p629_p3 = pneg %p628_p0 }
  0x1f   : > { %p634_p7 = pnand %p632_p5, %p629_p3 }
  0x21   : > { %637 = shalt.err (!%p634_p7)
}
  0x22   : > { %s638_s10 = scalar_lea.vmem %s149_s27, 1024  ;;  %p646_p1 = scmp.lt.s32.totalorder %s149_s27, %s149_s27 }
  0x23   : > { %p639_p9 = scmp.ne.s32.totalorder %s149_s27, %s638_s10  ;;  %p647_p4 = scmp.lt.s32.totalorder %s638_s10, %s638_s10 }
  0x25   : > { %p641_p10 = pnand %p639_p9, %p627_p13  ;;  %p648_p8 = por %p647_p4, %p646_p1 }
  0x27   : > { %p642_p6 = pneg %p641_p10 }
  0x29   : > { %p649_p2 = pnand %p648_p8, %p642_p6 }
  0x2b   : > { %652 = shalt.err (!%p649_p2)
}
  0x2c   : > { %s772_s11 = smov 128   ;;  %s773_s12 = smov 8  }
  0x2d   : > { %556 = dma.hbm_to_vmem [thread:$0]  (!%p867_p11), %s1045_s1, 1024, %s149_s27, [#allocation7], %s772_s11, %s772_s11, %s773_s12  }
  0x2e   : > { %p35_p1 = scmp.ge.s32.totalorder %s33_s29, 2  ;;  %s42_s20 = sadd.s32 1, %s757_s16 }
  0x2f   : > { %p49_p2 = scmp.ne.s32.totalorder %s757_s16, %s753_s15  ;;  %p50_p4 = scmp.eq.s32.totalorder %s769_s19, 0 }
  0x30   : > { %s1073_s29 = smov (%p35_p1, %s33_s29), 0  ;;  %p1059_p8 = scmp.ne.s32.totalorder %s1053_s22, 0 }
  0x31   : > { %p897_p6 = por %p50_p4, %p49_p2  ;;  %s37_s30 = ssub.s32 %s765_s18, %s1073_s29 }
  0x32   : > { %p903_p10 = por %p1059_p8, %p49_p2  ;;  %p566_p12 = scmp.lt.s32.totalorder %s769_s19, 2 }
  0x33   : > { %p40_p11 = scmp.eq.s32.totalorder %s37_s30, 0  ;;  %s165_s27 = sand.u32 1, %s757_s16  }
  0x34   : > { %s484_s4 = sshll.u32 %s165_s27, 6  ;;  %s498_s6 = sshll.u32 %s765_s18, 10 }
  0x35   : > { %s912_s5 = scalar_select %p40_p11, %s757_s16, %s42_s20  }
  0x36   : > { %s918_s9 = scalar_lea.hbm %s1044_s0, %s498_s6  ;;  %s169_s22 = scalar_lea.vmem [#allocation3], %s484_s4 }
  0x37   : > { %s179_s10 = sshll.u32 %s169_s22, 4  ;;  %p924_p13 = pnand %p566_p12, %p897_p6  ;;  %s920_s10 = int_to_ptr.vmem [resolvable:$true] %s179_s10 }
  0x38   : > { %s928_s2 = scalar_lea.sflag [#allocation4], %s165_s27  ;;  %s653_s20 = scalar_lea.hbm %s918_s9, 1024 }
  0x39   : > { %p654_p0 = scmp.ne.s32.totalorder %s918_s9, %s653_s20  ;;  %p655_p3 = pneg %p924_p13 }
  0x3a   : > { %s658_s26 = scalar_lea.hbm %s1044_s0, 2048  ;;  %p659_p9 = scmp.lt.u32.totalorder %s918_s9, %s1044_s0 }
  0x3b   : > { %p656_p5 = pnand %p655_p3, %p654_p0  ;;  %p660_p1 = scmp.lt.u32.totalorder %s658_s26, %s653_s20 }
  0x3c   : > { %p662_p4 = scmp.lt.u32.totalorder %s653_s20, %s918_s9 }
  0x3d   : > { %p657_p7 = pneg %p656_p5  ;;  %p661_p2 = por %p660_p1, %p659_p9 }
  0x3f   : > { %p663_p6 = por %p662_p4, %p661_p2 }
  0x41   : > { %p664_p8 = pnand %p663_p6, %p657_p7 }
  0x43   : > { %667 = shalt.err (!%p664_p8)
}
  0x44   : > { %s668_s27 = scalar_lea.vmem %s920_s10, 1024  ;;  %s774_s8 = smov [#allocation3]  }
  0x45   : > { %p669_p12 = scmp.ne.s32.totalorder %s920_s10, %s668_s27  ;;  %s673_s22 = sshll.u32 %s774_s8, 4  ;;  %s674_s22 = int_to_ptr.vmem [resolvable:$false] %s673_s22 }
  0x46   : > { %s675_s30 = scalar_lea.vmem %s674_s22, 2048  ;;  %p676_p5 = scmp.lt.s32.totalorder %s920_s10, %s674_s22 }
  0x47   : > { %p671_p11 = pnand %p669_p12, %p655_p3  ;;  %p677_p9 = scmp.lt.s32.totalorder %s675_s30, %s668_s27 }
  0x49   : > { %p672_p0 = pneg %p671_p11  ;;  %p678_p1 = por %p677_p9, %p676_p5 }
  0x4b   : > { %p679_p2 = pnand %p678_p1, %p672_p0 }
  0x4d   : > { %682 = shalt.err (!%p679_p2)
}
  0x4e   : > { %560 = dma.hbm_to_vmem [thread:$0]  (!%p924_p13), %s918_s9, 1024, %s920_s10, %s928_s2, %s772_s11, %s772_s11, %s773_s12  }
  0x4f   : > { %p1062_p3 = scmp.ne.s32.totalorder %s1056_s25, 0 }
  0x50   : > { %s962_s20 = sand.u32 (!%p1062_p3), 1, %s753_s15   ;;  %p1063_p7 = scmp.ne.s32.totalorder (!%p1062_p3), %s1054_s23, 0 }
  0x51   : > { %191 = sbr.rel (%p1062_p3) target bundleno = 449 (0x1c1), region = 32  ;;  %s488_s4 = sshll.u32 (!%p1062_p3), %s962_s20, 6 }
  0x52   : > { %s194_s26 = scalar_lea.sflag (!%p1062_p3), [#allocation4], %s962_s20  ;;  %s966_s6 = scalar_lea.vmem (!%p1062_p3), [#allocation3], %s488_s4 }
  0x58   : > { %736 = dma.done.wait (%p1063_p7), %s194_s26, 1024  }
  0x59   : > { %738 = vsyncadd (%p1063_p7), %s194_s26, 4294966272  ;;  %p1064_p13 = scmp.ne.s32.totalorder %s1052_s21, 0 }
  0x5b   : > { %740 = dma.done.wait (%p1064_p13), [#allocation7], 1024  }
  0x5c   : > { %742 = vsyncadd (%p1064_p13), [#allocation7], 4294966272  ;;  %v229_v0 = vld [vmem:[%s966_s6 + $0x20] sm:$0xff]  ;;  %v227_v1 = vld [vmem:[%s966_s6 + $0x10] sm:$0xff]  ;;  %s775_s25 = smov 32   ;;  %s776_s11 = smov 16  }
  0x5d   : > { %243 = vrot.lane.b32.xlu1 %v229_v0, %s775_s25  ;;  %235 = vrot.lane.b32.xlu0 %v227_v1, %s776_s11  ;;  %v230_v2 = vld [vmem:[%s966_s6 + $0x28] sm:$0xff]  ;;  %v266_v3 = vld [vmem:[#allocation6] sm:$0xff]  ;;  %v228_v4 = vld [vmem:[%s966_s6 + $0x18] sm:$0xff]  ;;  %s777_s21 = smov 48   ;;  %vm257_vm0 = vcmask 130048   ;;  %vm260_vm1 = vcmask 261120  }
  0x5e   : > { %v267_v5 = vld [vmem:[#allocation6 + $0x8] sm:$0xff]  ;;  %v268_v6 = vld [vmem:[#allocation6 + $0x10] sm:$0xff]  ;;  %v269_v8 = vld [vmem:[#allocation6 + $0x18] sm:$0xff]  ;;  %vm263_vm2 = vcmask 392192   ;;  %vm274_vm3 = vcmask 523264   ;;  %s356_s23 = sld [smem:[#allocation2]] }
  0x5f   : > { %v529_v7 = vpack.c.bf16 %v267_v5, %v266_v3  ;;  %v533_v9 = vpack.c.bf16 %v269_v8, %v268_v6  ;;  %v270_v10 = vld [vmem:[#allocation6 + $0x20] sm:$0xff]  ;;  %v271_v11 = vld [vmem:[#allocation6 + $0x28] sm:$0xff]  ;;  %v232_v12 = vld [vmem:[%s966_s6 + $0x38] sm:$0xff]  ;;  %s490_s12 = sshll.u32 %s962_s20, 4  ;;  %s499_s13 = sshll.u32 %s761_s17, 8 }
  0x60   : > { %v231_v13 = vld [vmem:[%s966_s6 + $0x30] sm:$0xff]  ;;  %v537_v14 = vpack.c.bf16 %v271_v11, %v270_v10  ;;  %v273_v16 = vld [vmem:[#allocation6 + $0x38] sm:$0xff]  ;;  %v225_v20 = vld [vmem:[%s966_s6] sm:$0xff]  ;;  %s223_s9 = scalar_lea.vmem [#allocation8], %s490_s12  ;;  %s993_s27 = scalar_lea.hbm %s1047_s3, %s499_s13 }
  0x61   : > { %245 = vrot.lane.b32.xlu1 %v230_v2, %s775_s25  ;;  %237 = vrot.lane.b32.xlu0 %v228_v4, %s776_s11  ;;  %v272_v15 = vld [vmem:[#allocation6 + $0x30] sm:$0xff]  ;;  %v226_v21 = vld [vmem:[%s966_s6 + $0x8] sm:$0xff]  ;;  %s382_s10 = sshll.u32 %s223_s9, 4  ;;  %s367_s17 = scalar_lea.sflag [#allocation5], %s962_s20  ;;  %s988_s10 = int_to_ptr.vmem [resolvable:$true] %s382_s10 }
  0x62   : > { %530 = vmatprep.subr.bf16.mxu0 %v529_v7  ;;  %v541_v17 = vpack.c.bf16 %v273_v16, %v272_v15  ;;  %s683_s8 = scalar_lea.vmem %s988_s10, 256  ;;  %s778_s22 = smov [#allocation8]  }
  0x63   : > { %532 = vmatpush3.bf16.msra.mxu0 %v529_v7  ;;  %p684_p4 = scmp.ne.s32.totalorder %s988_s10, %s683_s8  ;;  %s687_s30 = sshll.u32 %s778_s22, 4  ;;  %s688_s30 = int_to_ptr.vmem [resolvable:$false] %s687_s30 }
  0x64   : > { %534 = vmatprep.subr.bf16.mxu0 %v533_v9  ;;  %v359_v32 = vstv %s356_s23  ;;  %s689_s4 = scalar_lea.vmem %s688_s30, 512  ;;  %p690_p12 = scmp.lt.s32.totalorder %s988_s10, %s688_s30 }
  0x65   : > { %253 = vrot.lane.b32.xlu1 %v232_v12, %s777_s21  ;;  %251 = vrot.lane.b32.xlu0 %v231_v13, %s777_s21  ;;  %p685_p6 = pnand %p684_p4, %p903_p10  ;;  %p691_p11 = scmp.lt.s32.totalorder %s689_s4, %s683_s8 }
  0x67   : > { %536 = vmatpush3.bf16.msra.mxu0 %v533_v9  ;;  %p686_p8 = pneg %p685_p6  ;;  %p692_p0 = por %p691_p11, %p690_p12 }
  0x68   : > { %538 = vmatprep.subr.bf16.mxu0 %v537_v14 }
  0x69   : > { %p693_p5 = pnand %p692_p0, %p686_p8 }
  0x6b   : > { %540 = vmatpush3.bf16.msra.mxu0 %v537_v14 }
  0x6c   : > { %542 = vmatprep.subr.bf16.mxu0 %v541_v17 }
  0x6f   : > { %544 = vmatpush3.bf16.msra.mxu0 %v541_v17 }
  0xcf   : > { %v244_v18 = vpop.permute.xlu1 %243  ;;  %v236_v19 = vpop.permute.xlu0 %235 }
  0xd0   : > { %v258_v24 = vsel %vm257_vm0, %v225_v20, %v236_v19 }
  0xd1   : > { %v261_v29 = vsel %vm260_vm1, %v258_v24, %v244_v18 }
  0xd3   : > { %v246_v22 = vpop.permute.xlu1 %245  ;;  %v238_v23 = vpop.permute.xlu0 %237 }
  0xd4   : > { %v259_v25 = vsel %vm257_vm0, %v226_v21, %v238_v23 }
  0xd5   : > { %v262_v27 = vsel %vm260_vm1, %v259_v25, %v246_v22 }
  0xd7   : > { %v254_v26 = vpop.permute.xlu1 %253  ;;  %v252_v28 = vpop.permute.xlu0 %251 }
  0xd8   : > { %v265_v30 = vsel %vm263_vm2, %v262_v27, %v254_v26  ;;  %v264_v31 = vsel %vm263_vm2, %v261_v29, %v252_v28 }
  0xd9   : > { %526 = vmatprep.mubr.msk.f32.mxu0 %vm274_vm3, %v264_v31 }
  0xda   : > { %527 = vmatmul.mubr.msk.f32.vlgmr.msra.gmra.mrb[0].mxu0 %vm274_vm3, %v265_v30 }
 0x1ad   : > { %v528_v33 = vpop.f32.mrb[0].mxu0 }
 0x1ae   : > { %vm358_vm4 = vcmp.gt.f32.partialorder %v528_v33, 0.0  ;;  %v347_v34 = vpop.f32.mrb[1].mxu0  ;;  %v361_v35 = vmul.f32 %v528_v33, %v359_v32 }
 0x1af   : > { %vm357_vm5 = vcmp.gt.f32.partialorder %v347_v34, 0.0  ;;  %v360_v36 = vmul.f32 %v359_v32, %v347_v34 }
 0x1b0   : > { %v363_v37 = vsel %vm358_vm4, %v528_v33, %v361_v35 }
 0x1b1   : > { %v362_v38 = vsel %vm357_vm5, %v347_v34, %v360_v36  ;;  %365 = vst.msk [vmem:[%s223_s9 + $0x8] sm:$0xff] %vm274_vm3, %v363_v37 }
 0x1b2   : > { %364 = vst.msk [vmem:[%s223_s9] sm:$0xff] %vm274_vm3, %v362_v38 }
 0x1b3   : > { %696 = shalt.err (!%p693_p5)
}
 0x1b4   : > { %s697_s26 = scalar_lea.hbm %s993_s27, 256  ;;  %s701_s11 = scalar_lea.hbm %s1047_s3, 512 }
 0x1b5   : > { %p698_p9 = scmp.ne.s32.totalorder %s993_s27, %s697_s26  ;;  %p702_p3 = scmp.lt.u32.totalorder %s993_s27, %s1047_s3 }
 0x1b6   : > { %p703_p7 = scmp.lt.u32.totalorder %s701_s11, %s697_s26  ;;  %p705_p4 = scmp.lt.u32.totalorder %s697_s26, %s993_s27 }
 0x1b7   : > { %p699_p1 = pnand %p698_p9, %p903_p10 }
 0x1b8   : > { %p704_p13 = por %p703_p7, %p702_p3 }
 0x1b9   : > { %p700_p2 = pneg %p699_p1 }
 0x1ba   : > { %p706_p6 = por %p705_p4, %p704_p13 }
 0x1bc   : > { %p707_p8 = pnand %p706_p6, %p700_p2 }
 0x1be   : > { %710 = shalt.err (!%p707_p8)
}
 0x1bf   : > { %s779_s12 = smov 128   ;;  %s780_s9 = smov 8  }
 0x1c0   : > { %551 = dma.vmem_to_hbm [thread:$0]  (%p903_p10), %s988_s10, 256, %s993_s27, %s367_s17, %s779_s12, %s779_s12, %s780_s9  }
 0x1c1 PF: > { %s397_s13 = sand.u32 1, %s749_s14   ;;  %p1065_p12 = scmp.ne.s32.totalorder %s1055_s24, 0 }
 0x1c2   : > { %p1066_p11 = scmp.ge.s32.totalorder %s769_s19, 2  ;;  %s398_s2 = scalar_lea.sflag [#allocation5], %s397_s13 }
 0x1c4   : > { %p562_p0 = pnand %p1066_p11, %p1065_p12 }
 0x1c6   : > { %744 = dma.done.wait (!%p562_p0), %s398_s2, 256  }
 0x1c7   : > { %746 = vsyncadd (!%p562_p0), %s398_s2, 4294967040  ;;  %s21_s19 = sadd.s32 1, %s769_s19   ;;  %s1067_s14 = smov %s753_s15 }
 0x1c8   : > { %p18_p5 = scmp.ge.s32.totalorder %s21_s19, 4   ;;  %s1068_s15 = smov %s757_s16 }
 0x1c9   : > { %s1069_s16 = smov %s912_s5  ;;  %s1070_s17 = smov %s765_s18 }
 0x1ca   : > { %s1071_s18 = smov %s1073_s29  ;;  %20 = sbr.rel (!%p18_p5) target bundleno = 9 (0x9), region = 81 }
 0x1d1   :  { %403 = vsyncpa [#allocation4], 1 }
 0x1d2   :  { %405 = vsyncpa [#allocation4 + $0x1], 1 }
 0x1d3   :  { %406 = vsyncpa [#allocation7], 1 }
 0x1d4   :  { %407 = vsyncpa [#allocation5], 1 }
 0x1d5   :  { %409 = vsyncpa [#allocation5 + $0x1], 1 }

</bundles_post_ra>
